<compile_context>
chip_gen: v5e
topology: v5e:2x2
jax: 0.10.0
libtpu: 0.0.40
codegen_flags: <defaults>
</compile_context>

<pallas_src>
import functools

import jax
import jax.numpy as jnp
from jax import lax
from jax.experimental import pallas as pl
from jax.experimental.pallas import tpu as pltpu

_LEAKY_SLOPE = 0.1          # module-level constant in the PyTorch source
_MIN_ROWS = 256             # target MXU M-dim (one full pass on v6e/v7x 256-wide MXU)
_MAX_ROWS = 1024            # memory-bound sweet spot for tile height
_MIN_GRID_STEPS = 4         # >= 2 steps per TensorCore on v7x so DMAs can overlap
_FALLBACK_VMEM_CAP = 64 * 1024 * 1024   # v7x physical VMEM (most conservative)


def _vmem_capacity_bytes():
    """Generation-aware physical VMEM size; conservative fallback if unavailable."""
    try:
        cap = int(getattr(pltpu.get_tpu_info(), "vmem_capacity_bytes", 0) or 0)
        if cap > 0:
            return cap
    except Exception:
        pass
    return _FALLBACK_VMEM_CAP


def _estimate_vmem_bytes(bb, Lq, Lk, dk, dv, dm, act_isz, w_isz):
    """Rough VMEM residency for one grid step (double-buffered tiles + f32 temps)."""
    ins = 2 * act_isz * bb * (Lq * dm + Lq * dk + Lk * dk + Lk * dv)   # pipelined inputs
    outs = 2 * act_isz * bb * Lq * dm                                  # pipelined output
    temps = 4 * bb * (2 * Lq * Lk + Lq * dv + 2 * Lq * dm)             # scores/p, resid, fc-out/act
    fixed = 2 * w_isz * (dv * dm + dm)                                 # resident fc weight/bias
    return ins + outs + temps + fixed


def _pick_batch_block(B, Lq, Lk, dk, dv, dm, act_isz, w_isz, vmem_budget):
    """How many batch elements each grid step processes."""
    sub = max(8, 32 // max(act_isz, 1))   # min sublane tile: 8 f32 / 16 bf16 / 32 int8

    def layout_ok(bb):
        # The flat (bb*Lq, dm) block must be sublane-aligned unless it is the full array.
        return bb == B or (bb * Lq) % sub == 0

    def est(bb):
        return _estimate_vmem_bytes(bb, Lq, Lk, dk, dv, dm, act_isz, w_isz)

    divisors = [d for d in range(1, B + 1) if B % d == 0 and layout_ok(d)]
    if not divisors:
        divisors = [B]
    fits = [d for d in divisors if est(d) <= vmem_budget]
    # Guard: if nothing fits the budget, take the smallest-residency legal block
    # (never silently blow VMEM with a full-batch fallback).
    cands = fits if fits else [min(divisors, key=est)]

    def score(bb):
        rows, steps = bb * Lq, B // bb
        s = 0.5 * min(rows, _MAX_ROWS) / _MAX_ROWS          # prefer taller tiles ...
        if rows < _MIN_ROWS:
            s -= 2.0 * (_MIN_ROWS - rows) / _MIN_ROWS        # ... at least a full MXU pass
        if rows > _MAX_ROWS:
            s -= (rows - _MAX_ROWS) / _MAX_ROWS
        if steps < _MIN_GRID_STEPS:
            s -= 0.75 * (_MIN_GRID_STEPS - steps)            # keep both v7x TCs pipelined
        return s

    return max(cands, key=score)


def _core_attention_kernel(mi_ref, q_ref, k_ref, v_ref, w_ref, b_ref, o_ref,
                           *, inv_sqrt_dk, slope):
    # One grid step == BB batch elements.
    q = q_ref[...]                                   # (BB, Lq, dk) native dtype (MXU-ready)
    k = k_ref[...]                                   # (BB, Lk, dk)
    v = v_ref[...]                                   # (BB, Lk, dv)

    # Fold the 1/sqrt(dim_key) scale into q (Lq*dk muls, not Lq*Lk score muls).
    q = q * jnp.asarray(inv_sqrt_dk, dtype=q.dtype)

    # Batched q @ k^T contracting the LAST dims of both operands -> no in-kernel
    # transpose of k; f32 accumulation on the MXU.
    scores = lax.dot_general(
        q, k,
        dimension_numbers=(((2,), (2,)), ((0,), (0,))),
        preferred_element_type=jnp.float32)          # (BB, Lq, Lk) f32

    # Numerically-stable softmax numerator; normalization is deferred until
    # after the PV matmul (BB*Lq*dv scales instead of BB*Lq*Lk, and one fewer
    # (BB, Lq, Lk) f32 temporary -> lower VMEM/vreg pressure).
    m = jnp.max(scores, axis=-1, keepdims=True)
    p = jnp.exp(scores - m)
    denom = jnp.sum(p, axis=-1, keepdims=True)       # (BB, Lq, 1)

    resid = lax.dot_general(
        p.astype(v.dtype), v,
        dimension_numbers=(((2,), (1,)), ((0,), (0,))),
        preferred_element_type=jnp.float32)          # (BB, Lq, dv) f32
    resid = resid * pl.reciprocal(denom, approx=True)   # EUP reciprocal (free slot)

    # fc: flatten leading dims -> (BB*Lq, dv) so the MXU M dim is BB*Lq.
    bb, lq, dv = resid.shape
    resid2 = resid.reshape(bb * lq, dv)              # leading-dims-only reshape (supported)
    y = jnp.dot(resid2.astype(w_ref.dtype), w_ref[...],
                preferred_element_type=jnp.float32) + b_ref[...]   # (BB*Lq, dm) f32

    # Residual add + leaky_relu on the flat slab (max form: valid for 0<slope<1).
    x = mi_ref[...] + y
    out = jnp.maximum(x, slope * x)
    o_ref[...] = out.astype(o_ref.dtype)
    # TODO(synk): lane-dense (..., 128) repack of the dm<128 output (review's
    # biggest lever) needs a minor-dim relayout Mosaic reshape can't guarantee.


def core_attention(model_input, query, key, value, w_fc, b_fc,
                   *, slope=_LEAKY_SLOPE):
    B, Lq, dim_model = model_input.shape
    _, _, dim_key = query.shape
    _, Lk, dim_val = value.shape
    assert key.shape == (B, Lk, dim_key)
    assert w_fc.shape == (dim_val, dim_model)
    assert b_fc.shape == (dim_model,)

    act_isz = max(jnp.dtype(model_input.dtype).itemsize,
                  jnp.dtype(query.dtype).itemsize,
                  jnp.dtype(value.dtype).itemsize)
    w_isz = jnp.dtype(w_fc.dtype).itemsize

    vmem_cap = _vmem_capacity_bytes()
    vmem_budget = vmem_cap // 2                      # ~64 MiB on v5e/v6e, ~32 MiB on v7x
    bb = _pick_batch_block(B, Lq, Lk, dim_key, dim_val, dim_model,
                           act_isz, w_isz, vmem_budget)
    assert B % bb == 0
    grid = (B // bb,)
    rows = bb * Lq

    # Scoped-VMEM limit: ~3/4 of physical (generation-aware), raised if the
    # residency estimate of the chosen block needs more, capped at physical.
    est = _estimate_vmem_bytes(bb, Lq, Lk, dim_key, dim_val, dim_model,
                               act_isz, w_isz)
    vmem_limit = int(min(vmem_cap, max(3 * vmem_cap // 4, 5 * est // 4)))

    # Present model_input / output as flat 2-D (B*Lq, dim_model) slabs: larger,
    # sublane-dense tiles and no per-batch unit dim in the elementwise tail.
    mi_flat = model_input.reshape(B * Lq, dim_model)
    b_fc2d = b_fc.reshape(1, dim_model)

    kernel = functools.partial(_core_attention_kernel,
                               inv_sqrt_dk=1.0 / (dim_key ** 0.5),
                               slope=slope)

    out_flat = pl.pallas_call(
        kernel,
        out_shape=jax.ShapeDtypeStruct((B * Lq, dim_model), model_input.dtype),
        grid_spec=pltpu.PrefetchScalarGridSpec(
            num_scalar_prefetch=0,
            grid=grid,
            in_specs=[
                pl.BlockSpec((rows, dim_model), lambda b: (b, 0)),       # model_input (flat)
                pl.BlockSpec((bb, Lq, dim_key), lambda b: (b, 0, 0)),    # query
                pl.BlockSpec((bb, Lk, dim_key), lambda b: (b, 0, 0)),    # key
                pl.BlockSpec((bb, Lk, dim_val), lambda b: (b, 0, 0)),    # value
                # TODO(synk): grid-invariant; pipeline_mode=pl.Buffered(1) would
                # halve their VMEM but is skipped for lowering robustness.
                pl.BlockSpec((dim_val, dim_model), lambda b: (0, 0)),    # fc weight (resident)
                pl.BlockSpec((1, dim_model), lambda b: (0, 0)),          # fc bias (resident)
            ],
            out_specs=pl.BlockSpec((rows, dim_model), lambda b: (b, 0)),
        ),
        compiler_params=pltpu.CompilerParams(
            dimension_semantics=("parallel",),
            vmem_limit_bytes=vmem_limit),
    )(mi_flat, query, key, value, w_fc, b_fc2d)

    return out_flat.reshape(B, Lq, dim_model)


def _reference(model_input, query, key, value, w_fc, b_fc, slope=_LEAKY_SLOPE):
    dim_key = query.shape[-1]
    scores = jnp.einsum("bqd,bkd->bqk", query, key) / (dim_key ** 0.5)
    attn = jax.nn.softmax(scores, axis=-1)
    resid = jnp.einsum("bqk,bkv->bqv", attn, value)
    resid = resid @ w_fc + b_fc
    x = model_input + resid
    return jnp.where(x > 0, x, slope * x)


if __name__ == "__main__":
    B, Lq, Lk = 2, 8, 8
    dim_model, dim_key, dim_val = 32, 32, 32

    root = jax.random.PRNGKey(0)
    k_mi, k_q, k_k, k_v, k_w, k_b = jax.random.split(root, 6)

    model_input = jax.random.normal(k_mi, (B, Lq, dim_model), dtype=jnp.float32)
    query = jax.random.normal(k_q, (B, Lq, dim_key), dtype=jnp.float32)
    key = jax.random.normal(k_k, (B, Lk, dim_key), dtype=jnp.float32)
    value = jax.random.normal(k_v, (B, Lk, dim_val), dtype=jnp.float32)

    # BasicLinear(dim_val, dim_model, norm=None, act=None): nn.Linear with bias.
    # Deterministic init mimicking U(-1/sqrt(fan_in), 1/sqrt(fan_in)).
    bound = 1.0 / (dim_val ** 0.5)
    w_fc = jax.random.uniform(k_w, (dim_val, dim_model),
                              minval=-bound, maxval=bound, dtype=jnp.float32)
    b_fc = jax.random.uniform(k_b, (dim_model,),
                              minval=-bound, maxval=bound, dtype=jnp.float32)

    out = core_attention(model_input, query, key, value, w_fc, b_fc)
    out = jax.block_until_ready(out)

    ref = _reference(model_input, query, key, value, w_fc, b_fc)
    # Tolerance accounts for the EUP approximate reciprocal in the softmax denom.
    assert jnp.allclose(out, ref, atol=2e-3, rtol=2e-3), "mismatch vs reference"

    print("KERNEL_OK")
</pallas_src>

<mosaic_0001>
module attributes {stable_mosaic.version = 11 : i64} {
  func.func @_core_attention_kernel(%arg0: i32, %arg1: memref<8x32xf32, #tpu.memory_space<vmem>>, %arg2: memref<1x8x32xf32, #tpu.memory_space<vmem>>, %arg3: memref<1x8x32xf32, #tpu.memory_space<vmem>>, %arg4: memref<1x8x32xf32, #tpu.memory_space<vmem>>, %arg5: memref<32x32xf32, #tpu.memory_space<vmem>>, %arg6: memref<1x32xf32, #tpu.memory_space<vmem>>, %arg7: memref<8x32xf32, #tpu.memory_space<vmem>>) attributes {dimension_semantics = [#tpu.dimension_semantics<parallel>], iteration_bounds = array<i64: 2>, scalar_prefetch = 0 : i64, scratch_operands = 0 : i64, tpu.core_type = #tpu.core_type<tc>, window_params = [{transform_indices = @transform_0, window_bounds = array<i64: 8, 32>}, {transform_indices = @transform_1, window_bounds = array<i64: 1, 8, 32>}, {transform_indices = @transform_2, window_bounds = array<i64: 1, 8, 32>}, {transform_indices = @transform_3, window_bounds = array<i64: 1, 8, 32>}, {pipeline_mode = #tpu.pipeline_mode<synchronous>, transform_indices = @transform_4, window_bounds = array<i64: 32, 32>}, {pipeline_mode = #tpu.pipeline_mode<synchronous>, transform_indices = @transform_5, window_bounds = array<i64: 1, 32>}, {transform_indices = @transform_6, window_bounds = array<i64: 8, 32>}]} {
    %c0 = arith.constant 0 : index
    %c0_0 = arith.constant 0 : index
    %c0_1 = arith.constant 0 : index
    %0 = vector.load %arg2[%c0, %c0_0, %c0_1] : memref<1x8x32xf32, #tpu.memory_space<vmem>>, vector<1x8x32xf32>
    %c0_2 = arith.constant 0 : index
    %c0_3 = arith.constant 0 : index
    %c0_4 = arith.constant 0 : index
    %1 = vector.load %arg3[%c0_2, %c0_3, %c0_4] : memref<1x8x32xf32, #tpu.memory_space<vmem>>, vector<1x8x32xf32>
    %c0_5 = arith.constant 0 : index
    %c0_6 = arith.constant 0 : index
    %c0_7 = arith.constant 0 : index
    %2 = vector.load %arg4[%c0_5, %c0_6, %c0_7] : memref<1x8x32xf32, #tpu.memory_space<vmem>>, vector<1x8x32xf32>
    %cst = arith.constant 0.176776692 : f32
    %3 = vector.broadcast %cst : f32 to vector<1x8x32xf32>
    %4 = arith.mulf %0, %3 : vector<1x8x32xf32>
    %cst_8 = arith.constant dense<0.000000e+00> : vector<1x8x8xf32>
    %5 = tpu.matmul %4, %1, %cst_8 {dimension_numbers = #tpu.dot_dimension_numbers<[2], [2], [1], [1], [0, 0, 0, 1, 1, 1], [0], [0]>} : vector<1x8x32xf32>, vector<1x8x32xf32>, vector<1x8x8xf32> -> vector<1x8x8xf32>
    %cst_9 = arith.constant dense<0xFF800000> : vector<1x8xf32>
    %6 = vector.multi_reduction <maximumf>, %5, %cst_9 [2] : vector<1x8x8xf32> to vector<1x8xf32>
    %7 = vector.shape_cast %6 : vector<1x8xf32> to vector<1x8x1xf32>
    %8 = vector.broadcast %7 : vector<1x8x1xf32> to vector<1x8x8xf32>
    %9 = arith.subf %5, %8 : vector<1x8x8xf32>
    %10 = math.exp %9 : vector<1x8x8xf32>
    %cst_10 = arith.constant dense<0.000000e+00> : vector<1x8xf32>
    %11 = vector.multi_reduction <add>, %10, %cst_10 [2] : vector<1x8x8xf32> to vector<1x8xf32>
    %12 = vector.shape_cast %11 : vector<1x8xf32> to vector<1x8x1xf32>
    %cst_11 = arith.constant dense<0.000000e+00> : vector<1x8x32xf32>
    %13 = tpu.matmul %10, %2, %cst_11 {dimension_numbers = #tpu.dot_dimension_numbers<[2], [1], [1], [2], [0, 0, 0, 1, 1, 2], [0], [0]>} : vector<1x8x8xf32>, vector<1x8x32xf32>, vector<1x8x32xf32> -> vector<1x8x32xf32>
    %14 = tpu.reciprocal %12 {approx = true} : vector<1x8x1xf32> -> vector<1x8x1xf32>
    %15 = vector.broadcast %14 : vector<1x8x1xf32> to vector<1x8x32xf32>
    %16 = arith.mulf %13, %15 : vector<1x8x32xf32>
    %17 = vector.shape_cast %16 : vector<1x8x32xf32> to vector<8x32xf32>
    %c0_12 = arith.constant 0 : index
    %c0_13 = arith.constant 0 : index
    %18 = vector.load %arg5[%c0_12, %c0_13] : memref<32x32xf32, #tpu.memory_space<vmem>>, vector<32x32xf32>
    %cst_14 = arith.constant dense<0.000000e+00> : vector<8x32xf32>
    %19 = tpu.matmul %17, %18, %cst_14 {dimension_numbers = #tpu.dot_dimension_numbers<[1], [0], [0], [1], [0, 0, 1, 1], [], []>} : vector<8x32xf32>, vector<32x32xf32>, vector<8x32xf32> -> vector<8x32xf32>
    %c0_15 = arith.constant 0 : index
    %c0_16 = arith.constant 0 : index
    %20 = vector.load %arg6[%c0_15, %c0_16] : memref<1x32xf32, #tpu.memory_space<vmem>>, vector<1x32xf32>
    %21 = vector.broadcast %20 : vector<1x32xf32> to vector<8x32xf32>
    %22 = arith.addf %19, %21 : vector<8x32xf32>
    %c0_17 = arith.constant 0 : index
    %c0_18 = arith.constant 0 : index
    %23 = vector.load %arg1[%c0_17, %c0_18] : memref<8x32xf32, #tpu.memory_space<vmem>>, vector<8x32xf32>
    %24 = arith.addf %23, %22 : vector<8x32xf32>
    %cst_19 = arith.constant 1.000000e-01 : f32
    %25 = vector.broadcast %cst_19 : f32 to vector<8x32xf32>
    %26 = arith.mulf %25, %24 : vector<8x32xf32>
    %27 = arith.maximumf %24, %26 : vector<8x32xf32>
    %c0_20 = arith.constant 0 : index
    %c0_21 = arith.constant 0 : index
    %28 = vector.load %arg7[%c0_20, %c0_21] : memref<8x32xf32, #tpu.memory_space<vmem>>, vector<8x32xf32>
    tpu.vector_store %arg7[%c0_20, %c0_21], %27 {strides = array<i32>} : memref<8x32xf32, #tpu.memory_space<vmem>>, vector<8x32xf32>,
    return
  }
  func.func @transform_0(%arg0: i32) -> (i32, i32) {
    %c0_i32 = arith.constant 0 : i32
    %c0_i32_0 = arith.constant 0 : i32
    return %arg0, %c0_i32 : i32, i32
  }
  func.func @transform_1(%arg0: i32) -> (i32, i32, i32) {
    %c0_i32 = arith.constant 0 : i32
    %c0_i32_0 = arith.constant 0 : i32
    %c0_i32_1 = arith.constant 0 : i32
    return %arg0, %c0_i32, %c0_i32_0 : i32, i32, i32
  }
  func.func @transform_2(%arg0: i32) -> (i32, i32, i32) {
    %c0_i32 = arith.constant 0 : i32
    %c0_i32_0 = arith.constant 0 : i32
    %c0_i32_1 = arith.constant 0 : i32
    return %arg0, %c0_i32, %c0_i32_0 : i32, i32, i32
  }
  func.func @transform_3(%arg0: i32) -> (i32, i32, i32) {
    %c0_i32 = arith.constant 0 : i32
    %c0_i32_0 = arith.constant 0 : i32
    %c0_i32_1 = arith.constant 0 : i32
    return %arg0, %c0_i32, %c0_i32_0 : i32, i32, i32
  }
  func.func @transform_4(%arg0: i32) -> (i32, i32) {
    %c0_i32 = arith.constant 0 : i32
    %c0_i32_0 = arith.constant 0 : i32
    %c0_i32_1 = arith.constant 0 : i32
    return %c0_i32, %c0_i32_0 : i32, i32
  }
  func.func @transform_5(%arg0: i32) -> (i32, i32) {
    %c0_i32 = arith.constant 0 : i32
    %c0_i32_0 = arith.constant 0 : i32
    %c0_i32_1 = arith.constant 0 : i32
    return %c0_i32, %c0_i32_0 : i32, i32
  }
  func.func @transform_6(%arg0: i32) -> (i32, i32) {
    %c0_i32 = arith.constant 0 : i32
    %c0_i32_0 = arith.constant 0 : i32
    return %arg0, %c0_i32 : i32, i32
  }
}

</mosaic_0001>

<bundles_post_ra>
// kernel: tpu_custom_call.1
= control target key start
LH: loop header
LB: loop body
LE: loop exit
PB: predicated region body
PF: predicated region fallthrough
CT: control target
= control target key end

     0   :  { %s1269_s0 = inlined_call_operand.hbm [shape: f32[16,32], index: 0, kind: input, shape index: {}]   ;;  %s1270_s1 = inlined_call_operand.hbm [shape: f32[2,8,32], index: 1, kind: input, shape index: {}]   ;;  %s1271_s2 = inlined_call_operand.hbm [shape: f32[2,8,32], index: 2, kind: input, shape index: {}]   ;;  %s1272_s3 = inlined_call_operand.hbm [shape: f32[2,8,32], index: 3, kind: input, shape index: {}]   ;;  %s1273_s4 = inlined_call_operand.hbm [shape: f32[32,32], index: 4, kind: input, shape index: {}]   ;;  %s1274_s5 = inlined_call_operand.vmem [shape: f32[1,32], index: 5, kind: input, shape index: {}]   ;;  %s1275_s6 = inlined_call_operand.hbm [shape: f32[16,32], index: 6, kind: output, shape index: {}]  }
   0x1   :  { %1281 = sst [smem:[#allocation20_spill]] %s1270_s1 }
   0x2   :  { %1282 = sst [smem:[#allocation21_spill]] %s1273_s4 }
   0x3   :  { %11 = vsyncpa [#allocation3], 0 }
   0x4   :  { %13 = vsyncpa [#allocation3 + $0x1], 0 }
   0x5   :  { %14 = vsyncpa [#allocation6], 0 }
   0x6   :  { %16 = vsyncpa [#allocation6 + $0x1], 0 }
   0x7   :  { %17 = vsyncpa [#allocation9], 0 }
   0x8   :  { %19 = vsyncpa [#allocation9 + $0x1], 0 }
   0x9   :  { %20 = vsyncpa [#allocation4], 0 }
   0xa   :  { %22 = vsyncpa [#allocation4 + $0x1], 0  ;;  %s1036_s21 = smov 0   ;;  %s1038_s22 = smov 0  }
   0xb   :  { %s1040_s23 = smov 0   ;;  %s1042_s24 = smov 0  }
   0xc LB: > { %1283 = sst [smem:[#allocation17_spill]] %s992_s23  ;;  %s1057_s25 = sadd.s32 4294967295, %s996_s24   ;;  %s996_s24 = sphi %s1042_s24, %s1296_s24   ;;  %s992_s23 = sphi %s1040_s23, %s1298_s23   ;;  %s988_s22 = sphi %s1038_s22, %s1300_s22   ;;  %s984_s21 = sphi %s1036_s21, %s1299_s21  }
   0xd   : > { %s662_s26 = sadd.s32 4294967294, %s996_s24   ;;  %p48_p0 = scmp.ne.s32.totalorder %s988_s22, %s984_s21 }
   0xe   : > { %p49_p1 = scmp.eq.s32.totalorder %s1057_s25, 0  ;;  %p192_p2 = scmp.eq.s32.totalorder %s1057_s25, 1 }
   0xf   : > { %p198_p3 = scmp.eq.s32.totalorder %s662_s26, 1  ;;  %p663_p5 = scmp.ge.s32.totalorder %s996_s24, 1 }
  0x10   : > { %p1066_p4 = por %p49_p1, %p48_p0  ;;  %p205_p7 = scmp.lt.s32.totalorder %s996_s24, 3 }
  0x11   : > { %p1071_p6 = por %p198_p3, %p48_p0  ;;  %s1286_s4 = sld [smem:[#allocation21_spill]] }
  0x12   : > { %p1079_p8 = pnand %p663_p5, %p205_p7  ;;  %s998_s9 = smov [#allocation10]  }
  0x13   : > { %s218_s10 = sshll.u32 %s998_s9, 4  ;;  %s1089_s11 = sadd.s32 1, %s996_s24   ;;  %s219_s10 = int_to_ptr.vmem [resolvable:$true] %s218_s10 }
  0x14   : > { %p703_p9 = pneg %p1079_p8  ;;  %1288 = sst [smem:[#allocation18_spill]] %s1089_s11 }
  0x15   : > { %s999_s12 = smov 128   ;;  %s1000_s13 = smov 8  }
  0x16   : > { %p704_p10 = pnand %p703_p9, %p49_p1  ;;  %s32_s14 = ssub.s32 %s996_s24, %s1089_s11 }
  0x17   : > { %s216_s7 = sshll.u32 %s1286_s4, 4  ;;  %s35_s15 = sadd.s32 1, %s992_s23  ;;  %s217_s7 = int_to_ptr.hbm [resolvable:$true] %s216_s7 }
  0x18   : > { %706 = dma.hbm_to_vmem [thread:$0]  (!%p704_p10), %s217_s7, 512, %s219_s10, [#allocation9], %s999_s12, %s999_s12, %s1000_s13  }
  0x19   : > { %p33_p12 = scmp.eq.s32.totalorder %s32_s14, 0  ;;  %p42_p13 = scmp.ne.s32.totalorder %s992_s23, %s988_s22 }
  0x1a   : > { %p43_p0 = scmp.eq.s32.totalorder %s996_s24, 0  ;;  %p725_p3 = scmp.lt.s32.totalorder %s996_s24, 2 }
  0x1b   : > { %s1099_s16 = scalar_select %p33_p12, %s992_s23, %s35_s15  }
  0x1c   : > { %p44_p5 = por %p43_p0, %p42_p13  ;;  %p1103_p7 = por %p192_p2, %p42_p13 }
  0x1d   : > { %1289 = sst [smem:[#allocation19_spill]] %s1099_s16  ;;  %s1276_s18 = sand.u32 1, %s992_s23  }
  0x1e   : > { %s1109_s19 = sshll.u32 %s996_s24, 3  ;;  %s1113_s20 = sshll.u32 %s1276_s18, 3 }
  0x1f   : > { %p1115_p9 = pnand %p725_p3, %p44_p5  ;;  %s1277_s29 = sand.u32 1, %s996_s24  }
  0x20   : > { %s1292_s1 = sld [smem:[#allocation20_spill]]  ;;  %s258_s10 = scalar_lea.vmem [#allocation5], %s1113_s20 }
  0x21   : > { %s266_s12 = sshll.u32 %s258_s10, 4  ;;  %s1127_s14 = scalar_lea.sflag [#allocation6], %s1277_s29  ;;  %s267_s12 = int_to_ptr.vmem [resolvable:$true] %s266_s12 }
  0x22   : > { %p802_p10 = pneg %p1115_p9 }
  0x26   : > { %s262_s9 = scalar_lea.hbm %s1292_s1, %s1109_s19  ;;  %s805_s10 = scalar_lea.hbm %s1292_s1, 16 }
  0x27   : > { %s264_s13 = sshll.u32 %s262_s9, 4  ;;  %s265_s13 = int_to_ptr.hbm [resolvable:$true] %s264_s13 }
  0x28   : > { %s798_s15 = sshra.s32 %s265_s13, 4  ;;  %s799_s15 = int_to_ptr.hbm [resolvable:$true] %s798_s15 }
  0x29   : > { %s800_s18 = scalar_lea.hbm %s799_s15, 8  ;;  %p806_p0 = scmp.lt.s32.totalorder %s799_s15, %s1292_s1 }
  0x2a   : > { %p801_p2 = scmp.ne.s32.totalorder %s799_s15, %s800_s18  ;;  %p807_p3 = scmp.lt.s32.totalorder %s805_s10, %s800_s18 }
  0x2c   : > { %p803_p12 = pnand %p802_p10, %p801_p2  ;;  %p808_p5 = por %p807_p3, %p806_p0 }
  0x2e   : > { %p804_p13 = pneg %p803_p12 }
  0x30   : > { %p809_p11 = pnand %p808_p5, %p804_p13 }
  0x32   : > { %812 = shalt.err (!%p809_p11)
}
  0x33   : > { %713 = dma.hbm_to_vmem [thread:$0]  (!%p1115_p9), %s265_s13, 128, %s267_s12, %s1127_s14  }
  0x34   : > { %s243_s30 = scalar_lea.hbm %s1269_s0, %s1109_s19  ;;  %s239_s7 = scalar_lea.vmem [#allocation2], %s1113_s20 }
  0x35   : > { %s247_s11 = sshll.u32 %s239_s7, 4  ;;  %s245_s4 = sshll.u32 %s243_s30, 4  ;;  %s248_s11 = int_to_ptr.vmem [resolvable:$true] %s247_s11  ;;  %s246_s4 = int_to_ptr.hbm [resolvable:$true] %s245_s4 }
  0x36   : > { %s1293_s18 = sand.u32 1, %s992_s23   ;;  %s828_s10 = sshra.s32 %s246_s4, 4  ;;  %s829_s10 = int_to_ptr.hbm [resolvable:$true] %s828_s10 }
  0x37   : > { %s236_s15 = scalar_lea.sflag [#allocation3], %s1293_s18  ;;  %s830_s9 = scalar_lea.hbm %s829_s10, 8 }
  0x38   : > { %p831_p11 = scmp.ne.s32.totalorder %s829_s10, %s830_s9  ;;  %s835_s16 = scalar_lea.hbm %s1269_s0, 16 }
  0x39   : > { %p836_p13 = scmp.lt.s32.totalorder %s829_s10, %s1269_s0  ;;  %p837_p0 = scmp.lt.s32.totalorder %s835_s16, %s830_s9 }
  0x3a   : > { %p833_p2 = pnand %p831_p11, %p802_p10 }
  0x3b   : > { %p838_p3 = por %p837_p0, %p836_p13 }
  0x3c   : > { %p834_p12 = pneg %p833_p2 }
  0x3e   : > { %p839_p5 = pnand %p838_p3, %p834_p12 }
  0x40   : > { %842 = shalt.err (!%p839_p5)
}
  0x41   : > { %710 = dma.hbm_to_vmem [thread:$0]  (!%p1115_p9), %s246_s4, 128, %s248_s11, %s236_s15  }
  0x42   : > { %s281_s18 = scalar_lea.hbm %s1271_s2, %s1109_s19  ;;  %s277_s12 = scalar_lea.vmem [#allocation7], %s1113_s20 }
  0x43   : > { %s285_s13 = sshll.u32 %s277_s12, 4  ;;  %s283_s23 = sshll.u32 %s281_s18, 4  ;;  %s286_s13 = int_to_ptr.vmem [resolvable:$true] %s285_s13  ;;  %s284_s23 = int_to_ptr.hbm [resolvable:$true] %s283_s23 }
  0x44   : > { %s858_s1 = sshra.s32 %s284_s23, 4  ;;  %s865_s11 = scalar_lea.hbm %s1271_s2, 16  ;;  %s859_s1 = int_to_ptr.hbm [resolvable:$true] %s858_s1 }
  0x45   : > { %s860_s10 = scalar_lea.hbm %s859_s1, 8  ;;  %p866_p13 = scmp.lt.s32.totalorder %s859_s1, %s1271_s2 }
  0x46   : > { %p861_p11 = scmp.ne.s32.totalorder %s859_s1, %s860_s10  ;;  %p867_p0 = scmp.lt.s32.totalorder %s865_s11, %s860_s10 }
  0x48   : > { %p863_p2 = pnand %p861_p11, %p802_p10  ;;  %p868_p3 = por %p867_p0, %p866_p13 }
  0x4a   : > { %p864_p12 = pneg %p863_p2 }
  0x4c   : > { %p869_p5 = pnand %p868_p3, %p864_p12 }
  0x4e   : > { %872 = shalt.err (!%p869_p5)
}
  0x4f   : > { %716 = dma.hbm_to_vmem [thread:$0]  (!%p1115_p9), %s284_s23, 128, %s286_s13, %s1127_s14  }
  0x50   : > { %s300_s7 = scalar_lea.hbm %s1272_s3, %s1109_s19  ;;  %s296_s18 = scalar_lea.vmem [#allocation8], %s1113_s20 }
  0x51   : > { %s304_s12 = sshll.u32 %s296_s18, 4  ;;  %s302_s9 = sshll.u32 %s300_s7, 4  ;;  %s305_s12 = int_to_ptr.vmem [resolvable:$true] %s304_s12  ;;  %s303_s9 = int_to_ptr.hbm [resolvable:$true] %s302_s9 }
  0x52   : > { %s1294_s1 = sand.u32 1, %s996_s24   ;;  %s888_s16 = sshra.s32 %s303_s9, 4  ;;  %s889_s16 = int_to_ptr.hbm [resolvable:$true] %s888_s16 }
  0x53   : > { %s293_s10 = scalar_lea.sflag [#allocation9], %s1294_s1  ;;  %s890_s11 = scalar_lea.hbm %s889_s16, 8 }
  0x54   : > { %p891_p11 = scmp.ne.s32.totalorder %s889_s16, %s890_s11  ;;  %s895_s13 = scalar_lea.hbm %s1272_s3, 16 }
  0x55   : > { %p896_p13 = scmp.lt.s32.totalorder %s889_s16, %s1272_s3  ;;  %p897_p0 = scmp.lt.s32.totalorder %s895_s13, %s890_s11 }
  0x56   : > { %p893_p2 = pnand %p891_p11, %p802_p10 }
  0x57   : > { %p898_p3 = por %p897_p0, %p896_p13 }
  0x58   : > { %p894_p12 = pneg %p893_p2 }
  0x5a   : > { %p899_p5 = pnand %p898_p3, %p894_p12 }
  0x5c   : > { %902 = shalt.err (!%p899_p5)
}
  0x5d   : > { %719 = dma.hbm_to_vmem [thread:$0]  (!%p1115_p9), %s303_s9, 128, %s305_s12, %s293_s10  }
  0x5e   : > { %313 = sbr.rel (%p1079_p8) target bundleno = 637 (0x27d), region = 44  ;;  %s1199_s4 = sand.u32 (!%p1079_p8), 1, %s988_s22  }
  0x5f   : > { %s1202_s15 = sshll.u32 (!%p1079_p8), %s1199_s4, 3  ;;  %s316_s29 = scalar_lea.sflag (!%p1079_p8), [#allocation3], %s1199_s4 }
  0x60   : > { %s319_s30 = scalar_lea.vmem (!%p1079_p8), [#allocation2], %s1202_s15 }
  0x63   : > { %963 = dma.done.wait (%p1066_p4), %s316_s29, 128  }
  0x64   : > { %965 = vsyncadd (%p1066_p4), %s316_s29, 4294967168  ;;  %s325_s8 = sand.u32 1, %s1057_s25   ;;  %s329_s7 = scalar_lea.vmem [#allocation5], %s1202_s15 }
  0x65   : > { %s326_s26 = scalar_lea.sflag [#allocation6], %s325_s8 }
  0x66   : > { %967 = dma.done.wait (%p1066_p4), %s326_s26, 256  }
  0x67   : > { %969 = vsyncadd (%p1066_p4), %s326_s26, 4294967040  ;;  %s339_s18 = scalar_lea.vmem [#allocation7], %s1202_s15  ;;  %s346_s12 = scalar_lea.sflag [#allocation9], %s325_s8 }
  0x68   : > { %s349_s9 = scalar_lea.vmem [#allocation8], %s1202_s15 }
  0x69   : > { %971 = dma.done.wait (%p1066_p4), %s346_s12, 128  }
  0x6a   : > { %973 = vsyncadd (%p1066_p4), %s346_s12, 4294967168 }
  0x6b   : > { %975 = dma.done.wait (%p49_p1), [#allocation9], 512  }
  0x6c   : > { %977 = vsyncadd (%p49_p1), [#allocation9], 4294966784  ;;  %vm403_vm0 = vcmask 261120   ;;  %v400_v0 = vld [vmem:[%s339_s18] sm:$0xff]  ;;  %v399_v1 = vld [vmem:[%s329_s7] sm:$0xff]  ;;  %vm430_vm1 = vcmask 64512  }
  0x6d   : > { %681 = vmatpush.xpose.msk.msra.mxu0 %vm403_vm0, %v400_v0  ;;  %v402_v2 = vmul.f32 0.17677669, %v399_v1  ;;  %v401_v5 = vld [vmem:[%s349_s9] sm:$0xff]  ;;  %v466_v13 = vld [vmem:[#allocation10 + $0x8] sm:$0xff]  ;;  %v465_v14 = vld [vmem:[#allocation10] sm:$0xff]  ;;  %s686_s10 = sshll.u32 %s1057_s25, 3 }
  0x6e   : > { %458 = vmatpush.msra.mxu1 %v401_v5  ;;  %v468_v11 = vld [vmem:[#allocation10 + $0x18] sm:$0xff]  ;;  %v467_v12 = vld [vmem:[#allocation10 + $0x10] sm:$0xff]  ;;  %v763_v19 = vld [vmem:[%s1274_s5] ss:$0 sm:$0xff]  ;;  %s512_s23 = scalar_lea.hbm %s1275_s6, %s686_s10  ;;  %s398_s14 = scalar_lea.vmem [#allocation11], %s1202_s15 }
  0x6f   : > { %488 = vmatpush.msra.mxu2 %v468_v11  ;;  %v496_v21 = vld [vmem:[%s319_s30] sm:$0xff]  ;;  %s514_s13 = sshll.u32 %s398_s14, 4  ;;  %s516_s19 = sshll.u32 %s512_s23, 4  ;;  %s515_s13 = int_to_ptr.vmem [resolvable:$true] %s514_s13  ;;  %s517_s19 = int_to_ptr.hbm [resolvable:$true] %s516_s19 }
  0x70   : > { %682 = vmatmul.msk.f32.vlgmr.msra.gmra.mxu0 %vm403_vm0, %v402_v2  ;;  %s502_s25 = scalar_lea.sflag [#allocation4], %s1199_s4  ;;  %s932_s20 = sshra.s32 %s517_s19, 4  ;;  %s933_s20 = int_to_ptr.hbm [resolvable:$true] %s932_s20 }
  0x71   : > { %489 = vmatpush.msra.mxu2 %v467_v12  ;;  %s934_s29 = scalar_lea.hbm %s933_s20, 8  ;;  %s938_s15 = scalar_lea.hbm %s1275_s6, 16 }
  0x72   : > { %p935_p1 = scmp.ne.s32.totalorder %s933_s20, %s934_s29  ;;  %p939_p9 = scmp.lt.s32.totalorder %s933_s20, %s1275_s6 }
  0x73   : > { %490 = vmatpush.msra.mxu2 %v466_v13  ;;  %p940_p10 = scmp.lt.s32.totalorder %s938_s15, %s934_s29 }
  0x74   : > { %p936_p4 = pnand %p935_p1, %p1103_p7 }
  0x75   : > { %491 = vmatpush.msra.mxu2 %v465_v14  ;;  %p941_p11 = por %p940_p10, %p939_p9 }
  0x76   : > { %p937_p8 = pneg %p936_p4 }
  0x78   : > { %p942_p2 = pnand %p941_p11, %p937_p8 }
  0xed   : > { %v427_v3 = vpop.f32.mrf.mxu0 }
  0xee   : > { %v431_v4 = vsel %vm430_vm1, %v427_v3, -inf }
  0xef   : > { %432 = vmax.xlane.f32.xlu0 %v431_v4 }
 0x162   : > { %v433_v6 = vpop.xlane.xlu0 %432 }
 0x163   : > { %v434_v7 = vsub.f32 %v427_v3, %v433_v6 }
 0x165   : > { %v435_v8 = vmul.f32 1.442695, %v434_v7 }
 0x167   : > { %764 = vpow2.f32 %v435_v8 }
 0x16d   : > { %v765_v9 = vpop.eup %764 }
 0x16e   : > { %683 = vmatmul.msk.f32.vlgmr.msra.gmra.mxu1 %vm430_vm1, %v765_v9  ;;  %v437_v10 = vsel %vm430_vm1, %v765_v9, 0.0 }
 0x16f   : > { %438 = vadd.xlane.f32.xlu0 %v437_v10 }
 0x1e2   : > { %v439_v15 = vpop.xlane.xlu0 %438 }
 0x1e3   : > { %766 = vrcp.f32 %v439_v15 }
 0x1e9   : > { %v767_v16 = vpop.eup %766 }
 0x1eb   : > { %v460_v17 = vpop.f32.mrf.mxu1 }
 0x1ec   : > { %v464_v18 = vmul.f32 %v767_v16, %v460_v17 }
 0x1ee   : > { %684 = vmatmul.msk.f32.vlgmr.msra.gmra.mxu2 %vm403_vm0, %v464_v18 }
 0x271   : > { %v493_v20 = vpop.f32.mrf.mxu2 }
 0x272   : > { %v494_v22 = vadd.f32 %v763_v19, %v493_v20 }
 0x274   : > { %v497_v23 = vadd.f32 %v496_v21, %v494_v22 }
 0x276   : > { %v498_v24 = vmul.f32 0.1, %v497_v23 }
 0x278   : > { %v499_v25 = vmax.f32 %v497_v23, %v498_v24 }
 0x27a   : > { %500 = vst.msk [vmem:[%s398_s14] sm:$0xff] %vm403_vm0, %v499_v25 }
 0x27b   : > { %945 = shalt.err (!%p942_p2)
}
 0x27c   : > { %701 = dma.vmem_to_hbm [thread:$0]  (%p1103_p7), %s515_s13, 128, %s517_s19, %s502_s25  }
 0x27d PF: > { %s528_s4 = sand.u32 1, %s984_s21   ;;  %p1295_p12 = scmp.ge.s32.totalorder %s996_s24, 2 }
 0x27e   : > { %s529_s18 = scalar_lea.sflag [#allocation4], %s528_s4 }
 0x27f   : > { %p721_p13 = pnand %p1295_p12, %p1071_p6 }
 0x281   : > { %p722_p0 = pneg %p721_p13 }
 0x283   : > { %979 = dma.done.wait (%p722_p0), %s529_s18, 128  }
 0x284   : > { %981 = vsyncadd (%p722_p0), %s529_s18, 4294967168  ;;  %s1296_s24 = sld [smem:[#allocation18_spill]]  ;;  %s1299_s21 = smov %s988_s22 }
 0x285   : > { %s1297_s12 = sld [smem:[#allocation17_spill]] }
 0x286   : > { %s1298_s23 = sld [smem:[#allocation19_spill]] }
 0x28a   : > { %p25_p3 = scmp.ge.s32.totalorder %s1296_s24, 4  }
 0x28b   : > { %s1300_s22 = smov %s1297_s12 }
 0x28c   :  { %27 = sbr.rel (!%p25_p3) target bundleno = 12 (0xc), region = 130 }
 0x291   :  { %535 = vsyncpa [#allocation3], 1 }
 0x292   :  { %537 = vsyncpa [#allocation3 + $0x1], 1 }
 0x293   :  { %538 = vsyncpa [#allocation6], 1 }
 0x294   :  { %540 = vsyncpa [#allocation6 + $0x1], 1 }
 0x295   :  { %541 = vsyncpa [#allocation9], 1 }
 0x296   :  { %543 = vsyncpa [#allocation9 + $0x1], 1 }
 0x297   :  { %544 = vsyncpa [#allocation4], 1 }
 0x298   :  { %546 = vsyncpa [#allocation4 + $0x1], 1 }

</bundles_post_ra>
